<compile_context>
chip_gen: v6e
topology: v6e:2x2x1
jax: 0.10.0
libtpu: 0.0.40
codegen_flags: <defaults>
</compile_context>

<pallas_src>
import functools

import jax
import jax.numpy as jnp
from jax.experimental import pallas as pl
from jax.experimental.pallas import tpu as pltpu


def _telu_kernel(x_ref, o_ref):
    xf = x_ref[...].astype(jnp.float32)
    # exp and tanh both issue on the EUP slot; the multiply is VPU filler.
    o_ref[...] = (xf * jnp.tanh(jnp.exp(xf))).astype(o_ref.dtype)


# Widest-first lane candidates: a lane-dense output slab -> unmasked vst runs.
_LANE_CANDIDATES = (2048, 1024, 512, 256, 128)
# ~2 MiB per VMEM buffer (in + out, double-buffered = 8 MiB of block buffers):
# near the HBM roofline on v5e/v6e/v7x; larger tiles are worth <= 1-2%.
_TILE_BYTES = 2 * 1024 * 1024
# Headroom for f32 intermediates on v5e (16 MiB default scoped VMEM); this is
# <= physical VMEM on every generation (v7x: 64 MiB physical).
_VMEM_LIMIT_BYTES = 32 * 1024 * 1024


@functools.lru_cache(maxsize=None)
def _row_grid_semantics():
    """Pick grid dimension_semantics once per process.

    CORE_PARALLEL shards the row grid across TensorCores (the ~2x lever on
    v7x's 2-TC chips); plain "parallel"/"arbitrary" are measured no-ops.  We
    probe with a tiny kernel (compile + numeric check) and fall back to
    "parallel" if the backend rejects it or produces wrong results.
    """
    core_parallel = getattr(pltpu, "CORE_PARALLEL", None)
    if core_parallel is None:
        return ("parallel",)

    def _probe(x):
        return pl.pallas_call(
            _telu_kernel,
            out_shape=jax.ShapeDtypeStruct((16, 128), jnp.float32),
            grid_spec=pl.GridSpec(
                grid=(2,),
                in_specs=[pl.BlockSpec((8, 128), lambda i: (i, 0))],
                out_specs=pl.BlockSpec((8, 128), lambda i: (i, 0)),
            ),
            compiler_params=pltpu.CompilerParams(
                dimension_semantics=(core_parallel,)),
        )(x)

    try:
        xp = jnp.linspace(-4.0, 4.0, 16 * 128, dtype=jnp.float32)
        xp = xp.reshape(16, 128)
        got = jax.block_until_ready(jax.jit(_probe)(xp))
        want = xp * jnp.tanh(jnp.exp(xp))
        if bool(jnp.allclose(got, want, atol=1e-5, rtol=1e-5)):
            return (core_parallel,)
    except Exception:  # noqa: BLE001 -- any rejection -> portable fallback
        pass
    return ("parallel",)


def _telu_slab(slab: jax.Array) -> jax.Array:
    """Run the TeLU kernel over a (rows, lanes) slab (lanes % 128 == 0)."""
    rows, lanes = slab.shape
    itemsize = jnp.dtype(slab.dtype).itemsize
    # ~2 MiB per buffer in the *actual* dtype; multiple of 8 rows for every
    # lane candidate, so the (8, 128) block constraint always holds.
    budget_rows = max(8, _TILE_BYTES // (lanes * itemsize))
    block_rows = min(rows, budget_rows)
    grid = (pl.cdiv(rows, block_rows),)

    n = rows * lanes
    cost = pl.CostEstimate(
        flops=n,                    # one multiply per element
        transcendentals=2 * n,      # exp + tanh per element
        bytes_accessed=2 * n * itemsize,
    )
    return pl.pallas_call(
        _telu_kernel,
        out_shape=jax.ShapeDtypeStruct((rows, lanes), slab.dtype),
        grid_spec=pl.GridSpec(
            grid=grid,
            in_specs=[pl.BlockSpec((block_rows, lanes), lambda i: (i, 0))],
            out_specs=pl.BlockSpec((block_rows, lanes), lambda i: (i, 0)),
        ),
        compiler_params=pltpu.CompilerParams(
            dimension_semantics=_row_grid_semantics(),
            vmem_limit_bytes=_VMEM_LIMIT_BYTES,
        ),
        cost_estimate=cost,
    )(slab)


def _telu_jnp(x: jax.Array) -> jax.Array:
    """Tiny reference path for <128-element remainders."""
    xf = x.astype(jnp.float32)
    return (xf * jnp.tanh(jnp.exp(xf))).astype(x.dtype)


@jax.jit
def telu(x: jax.Array) -> jax.Array:
    """TeLU(x) = x * tanh(exp(x)), elementwise, any shape."""
    n = x.size
    if n == 0:
        return x

    flat = x.reshape(-1)  # metadata-only under jit
    lanes = next((c for c in _LANE_CANDIDATES if n % c == 0), 128)
    n_main = (n // lanes) * lanes

    if n_main == n:
        # Fast path: zero-copy reshape in, zero-copy reshape out.
        return _telu_slab(flat.reshape(n // lanes, lanes)).reshape(x.shape)

    if n_main == 0:
        # Fewer than 128 elements: not worth a kernel launch.
        return _telu_jnp(x)

    # Ragged size: kernel on the 128-aligned prefix, tiny jnp op on the
    # <128-element tail (replaces the old whole-tensor pad + slice, which
    # tripled HBM traffic).
    head = _telu_slab(flat[:n_main].reshape(n_main // lanes, lanes))
    tail = _telu_jnp(flat[n_main:])
    return jnp.concatenate([head.reshape(-1), tail]).reshape(x.shape)


if __name__ == "__main__":
    # Warm the CORE_PARALLEL probe outside of any trace.
    _row_grid_semantics()

    key = jax.random.PRNGKey(0)

    # Typical conv-net activation shape; lane-aligned fast path (2048 elems).
    x = jax.random.normal(key, (2, 4, 16, 16), dtype=jnp.float32)
    y = jax.block_until_ready(telu(x))
    y_ref = x * jnp.tanh(jnp.exp(x))
    assert y.shape == x.shape and y.dtype == x.dtype
    assert jnp.allclose(y, y_ref, atol=1e-5, rtol=1e-5)

    # Non-128-divisible size > 128: aligned prefix through the kernel, ragged
    # tail via the tiny jnp path (2*3*50 = 300 = 256 + 44).
    x2 = jax.random.normal(jax.random.PRNGKey(1), (2, 3, 50), dtype=jnp.float32)
    y2 = jax.block_until_ready(telu(x2))
    y2_ref = x2 * jnp.tanh(jnp.exp(x2))
    assert y2.shape == x2.shape and y2.dtype == x2.dtype
    assert jnp.allclose(y2, y2_ref, atol=1e-5, rtol=1e-5)

    # Tiny (<128 element) input: pure jnp path.
    x3 = jax.random.normal(jax.random.PRNGKey(2), (3, 5, 7), dtype=jnp.float32)
    y3 = jax.block_until_ready(telu(x3))
    y3_ref = x3 * jnp.tanh(jnp.exp(x3))
    assert y3.shape == x3.shape and y3.dtype == x3.dtype
    assert jnp.allclose(y3, y3_ref, atol=1e-5, rtol=1e-5)

    print("KERNEL_OK")
</pallas_src>

<mosaic_0001>
module attributes {stable_mosaic.version = 11 : i64} {
  func.func @_telu_kernel(%arg0: i32, %arg1: memref<8x128xf32, #tpu.memory_space<vmem>>, %arg2: memref<8x128xf32, #tpu.memory_space<vmem>>) attributes {dimension_semantics = [#tpu.dimension_semantics<core_parallel>], iteration_bounds = array<i64: 2>, scalar_prefetch = 0 : i64, scratch_operands = 0 : i64, tpu.core_type = #tpu.core_type<tc>, window_params = [{transform_indices = @transform_0, window_bounds = array<i64: 8, 128>}, {transform_indices = @transform_1, window_bounds = array<i64: 8, 128>}]} {
    %c0 = arith.constant 0 : index
    %c0_0 = arith.constant 0 : index
    %0 = vector.load %arg1[%c0, %c0_0] : memref<8x128xf32, #tpu.memory_space<vmem>>, vector<8x128xf32>
    %1 = math.exp %0 : vector<8x128xf32>
    %2 = math.tanh %1 : vector<8x128xf32>
    %3 = arith.mulf %0, %2 : vector<8x128xf32>
    %c0_1 = arith.constant 0 : index
    %c0_2 = arith.constant 0 : index
    %4 = vector.load %arg2[%c0_1, %c0_2] : memref<8x128xf32, #tpu.memory_space<vmem>>, vector<8x128xf32>
    tpu.vector_store %arg2[%c0_1, %c0_2], %3 {strides = array<i32>} : memref<8x128xf32, #tpu.memory_space<vmem>>, vector<8x128xf32>,
    return
  }
  func.func @transform_0(%arg0: i32) -> (i32, i32) {
    %c0_i32 = arith.constant 0 : i32
    %c0_i32_0 = arith.constant 0 : i32
    return %arg0, %c0_i32 : i32, i32
  }
  func.func @transform_1(%arg0: i32) -> (i32, i32) {
    %c0_i32 = arith.constant 0 : i32
    %c0_i32_0 = arith.constant 0 : i32
    return %arg0, %c0_i32 : i32, i32
  }
}

module attributes {stable_mosaic.version = 11 : i64} {
  func.func @_telu_kernel(%arg0: i32, %arg1: memref<1x2048xf32, #tpu.memory_space<vmem>>, %arg2: memref<1x2048xf32, #tpu.memory_space<vmem>>) attributes {dimension_semantics = [#tpu.dimension_semantics<parallel>], iteration_bounds = array<i64: 1>, scalar_prefetch = 0 : i64, scratch_operands = 0 : i64, tpu.core_type = #tpu.core_type<tc>, window_params = [{transform_indices = @transform_0, window_bounds = array<i64: 1, 2048>}, {transform_indices = @transform_1, window_bounds = array<i64: 1, 2048>}]} {
    %c0 = arith.constant 0 : index
    %c0_0 = arith.constant 0 : index
    %0 = vector.load %arg1[%c0, %c0_0] : memref<1x2048xf32, #tpu.memory_space<vmem>>, vector<1x2048xf32>
    %1 = math.exp %0 : vector<1x2048xf32>
    %2 = math.tanh %1 : vector<1x2048xf32>
    %3 = arith.mulf %0, %2 : vector<1x2048xf32>
    %c0_1 = arith.constant 0 : index
    %c0_2 = arith.constant 0 : index
    %4 = vector.load %arg2[%c0_1, %c0_2] : memref<1x2048xf32, #tpu.memory_space<vmem>>, vector<1x2048xf32>
    tpu.vector_store %arg2[%c0_1, %c0_2], %3 {strides = array<i32>} : memref<1x2048xf32, #tpu.memory_space<vmem>>, vector<1x2048xf32>,
    return
  }
  func.func @transform_0(%arg0: i32) -> (i32, i32) {
    %c0_i32 = arith.constant 0 : i32
    %c0_i32_0 = arith.constant 0 : i32
    return %arg0, %c0_i32 : i32, i32
  }
  func.func @transform_1(%arg0: i32) -> (i32, i32) {
    %c0_i32 = arith.constant 0 : i32
    %c0_i32_0 = arith.constant 0 : i32
    return %arg0, %c0_i32 : i32, i32
  }
}

</mosaic_0001>

<bundles_post_ra>
// kernel: telu.1
= control target key start
LH: loop header
LB: loop body
LE: loop exit
PB: predicated region body
PF: predicated region fallthrough
CT: control target
= control target key end

     0   :  { %s54_s0 = inlined_call_operand.vmem [shape: f32[1,2048], index: 0, kind: input, shape index: {}]   ;;  %s55_s1 = inlined_call_operand.vmem [shape: f32[1,2048], index: 1, kind: output, shape index: {}]  }
   0x1   :  { %v8_v0 = vld [vmem:[%s54_s0] sm:$0xff]  ;;  %v9_v1 = vld [vmem:[%s54_s0 + $0x8] sm:$0xff] }
   0x2   :  { %v10_v2 = vmul.f32 1.442695, %v8_v0  ;;  %v12_v3 = vmul.f32 1.442695, %v9_v1 }
   0x4   :  { %24 = vpow2.f32 %v10_v2 }
   0x5   :  { %26 = vpow2.f32 %v12_v3 }
  0x11   :  { %v25_v4 = vpop.eup %24 }
  0x12   :  { %v27_v5 = vpop.eup %26  ;;  %28 = vtanh.f32 %v25_v4 }
  0x13   :  { %30 = vtanh.f32 %v27_v5 }
  0x1f   :  { %v29_v6 = vpop.eup %28 }
  0x20   :  { %v31_v7 = vpop.eup %30  ;;  %v16_v8 = vmul.f32 %v29_v6, %v8_v0 }
  0x21   :  { %v17_v9 = vmul.f32 %v31_v7, %v9_v1 }
  0x22   :  { %18 = vst [vmem:[%s55_s1] sm:$0xff] %v16_v8 }
  0x23   :  { %19 = vst [vmem:[%s55_s1 + $0x8] sm:$0xff] %v17_v9 }

</bundles_post_ra>
